<compile_context>
chip_gen: v7x
topology: tpu7x:2x2x1
jax: 0.10.0
libtpu: 0.0.40
codegen_flags: <defaults>
</compile_context>

<pallas_src>
import functools

import jax
import jax.numpy as jnp
from jax.experimental import pallas as pl
from jax.experimental.pallas import tpu as pltpu


def _pcl_kernel(anchor_ref, pos_ref, out_ref, *, scale_even, scale_odd,
                logit_scale):
    """Batched per-sample contrastive loss.

    anchor_ref / pos_ref : (1, Dh, KP, Nb) f32 — Nb samples on the lane axis,
                           keypoints on sublanes, trajectory index Dh leading.
    out_ref              : (1, 1, Nb) f32 — per-sample (unweighted) loss.
    scale_even/scale_odd : static Python floats (1/W, 1/H) or None when the
                           normalization is folded into logit_scale (W == H).
    logit_scale          : static Python float, -1/tau (optionally * (1/W)^2).
    """
    _, dh, kp, nb = anchor_ref.shape

    dist2 = jnp.zeros((kp, kp, nb), jnp.float32)   # pairwise sq. distances
    diag = jnp.zeros((kp, nb), jnp.float32)        # matching-trajectory dists

    # Statically unrolled loop over the (small) trajectory axis.  Each step
    # loads only a (KP, Nb) slice straight from VMEM, so the live vreg set is
    # just the accumulators — no (KP, KP, Dh, Nb) temp, no spills.
    for d in range(dh):
        a_d = anchor_ref[0, d, :, :]               # (KP, Nb)
        p_d = pos_ref[0, d, :, :]                  # (KP, Nb)
        s = scale_even if (d % 2 == 0) else scale_odd
        if s is not None:                          # W != H: static scalar scale
            a_d = a_d * jnp.float32(s)
            p_d = p_d * jnp.float32(s)
        dif = a_d[:, None, :] - p_d[None, :, :]    # (KPa, KPp, Nb) — VPU only
        dist2 = dist2 + dif * dif
        dde = a_d - p_d                            # diagonal (matching kp)
        diag = diag + dde * dde

    logits = dist2 * logit_scale                   # (KPa, KPp, Nb)
    diag_logits = diag * logit_scale               # (KP, Nb)

    # Softmax cross-entropy over the positive-trajectory axis (KPp).
    m = jnp.max(logits, axis=1)                                     # (KP, Nb)
    lse = m + jnp.log(jnp.sum(jnp.exp(logits - m[:, None, :]), axis=1))
    per_kp = lse - diag_logits                                      # (KP, Nb)

    # Mean over keypoints -> per-sample loss; one lane-dense store per step.
    out_ref[0] = jnp.mean(per_kp, axis=0, keepdims=True)            # (1, Nb)


def patch_contrastive_loss(coords, status, images, *, tau=0.1, nb=256):
    """coords: (N, SF, KP, 2), status: (N,), images: (N, SF, C, H, W)."""
    N, SF, KP, _ = coords.shape
    _, _, _, H, W = images.shape
    assert SF % 2 == 0, "number of frames must be even to form anchor/positive halves"

    half = SF // 2
    Dh = half * 2

    # Pick the sample-batch size: default 256 (amortizes per-step pipeline
    # overhead), capped so G >= 2 whenever N > 128 (v7x megacore sharding of
    # the "parallel" grid axis), always a multiple of 128 (lane width).
    nb_cap = 128 * max(1, N // 256)
    nb = max(128, (min(nb, nb_cap) // 128) * 128)
    G = pl.cdiv(N, nb)
    n_pad = G * nb
    pad = n_pad - N

    # Same permutation/split as the torch forward, composed with padding and
    # the kernel-layout transpose into a single copy per operand:
    #   target element (g, 2*f + c, k, i) = coords[g*nb + i, f (+ half), k, c]
    # i.e. (G, Dh, KP, Nb): samples on lanes, keypoints on sublanes, and each
    # trajectory coordinate d is a contiguous (KP, Nb) VMEM slab.
    traj = coords.astype(jnp.float32)
    traj = jnp.pad(traj, ((0, pad), (0, 0), (0, 0), (0, 0)))   # (Npad, SF, KP, 2)
    traj = traj.reshape(G, nb, SF, KP, 2)

    def to_kernel_layout(t):                     # t: (G, nb, half, KP, 2)
        t = jnp.transpose(t, (0, 2, 4, 3, 1))    # (G, half, 2, KP, nb)
        return t.reshape(G, Dh, KP, nb)

    anchor_t = to_kernel_layout(traj[:, :, :half])
    pos_t = to_kernel_layout(traj[:, :, half:])

    # Coordinate normalization (x/W, y/H) folded in at trace time.
    if W == H:
        scale_even = scale_odd = None
        logit_scale = -1.0 / (tau * float(W) * float(W))
    else:
        scale_even, scale_odd = 1.0 / float(W), 1.0 / float(H)
        logit_scale = -1.0 / tau

    kernel = functools.partial(
        _pcl_kernel, scale_even=scale_even, scale_odd=scale_odd,
        logit_scale=logit_scale)

    per_sample = pl.pallas_call(
        kernel,
        out_shape=jax.ShapeDtypeStruct((G, 1, nb), jnp.float32),
        grid_spec=pltpu.PrefetchScalarGridSpec(
            num_scalar_prefetch=0,
            grid=(G,),
            in_specs=[
                pl.BlockSpec((1, Dh, KP, nb), lambda g: (g, 0, 0, 0)),
                pl.BlockSpec((1, Dh, KP, nb), lambda g: (g, 0, 0, 0)),
            ],
            out_specs=pl.BlockSpec((1, 1, nb), lambda g: (g, 0, 0)),
        ),
        compiler_params=pltpu.CompilerParams(
            dimension_semantics=("parallel",),
            # Let XLA fuse the wrapper relayout into the operand DMA instead of
            # materializing anchor_t/pos_t in HBM first.
            allow_input_fusion=[True, True]),
    )(anchor_t, pos_t)

    # Status weighting + reduction over samples is trivial; doing it in XLA
    # keeps the kernel grid fully parallel (no serial scalar accumulator).
    per_sample = per_sample.reshape(n_pad)
    w = jnp.pad(status.astype(jnp.float32), (0, pad))
    # TODO(synk): all-zero status returns ~0 (sum / 1e-6); original MaxMatchLoss
    #   behavior for that case is unspecified.
    return jnp.sum(per_sample * w) / jnp.maximum(jnp.sum(w), 1e-6)


if __name__ == "__main__":
    key = jax.random.PRNGKey(0)
    N, SF, KP, C, H, W = 2, 8, 8, 3, 16, 16
    k1, k2, k3 = jax.random.split(key, 3)

    coords = jnp.stack(
        [jax.random.uniform(k1, (N, SF, KP), minval=0.0, maxval=float(W)),
         jax.random.uniform(k2, (N, SF, KP), minval=0.0, maxval=float(H))],
        axis=-1)                                   # (N, SF, KP, 2)
    status = jnp.ones((N,), jnp.float32)           # all samples valid
    images = jax.random.normal(k3, (N, SF, C, H, W), jnp.float32)

    loss = patch_contrastive_loss(coords, status, images)
    jax.block_until_ready(loss)
    assert loss.shape == () and bool(jnp.isfinite(loss))
    print("KERNEL_OK")
</pallas_src>

<mosaic_0001>
module attributes {stable_mosaic.version = 11 : i64} {
  func.func @_pcl_kernel(%arg0: i32, %arg1: memref<1x8x8x128xf32, #tpu.memory_space<vmem>>, %arg2: memref<1x8x8x128xf32, #tpu.memory_space<vmem>>, %arg3: memref<1x1x128xf32, #tpu.memory_space<vmem>>) attributes {dimension_semantics = [#tpu.dimension_semantics<parallel>], iteration_bounds = array<i64: 1>, scalar_prefetch = 0 : i64, scratch_operands = 0 : i64, tpu.core_type = #tpu.core_type<tc>, window_params = [{transform_indices = @transform_0, window_bounds = array<i64: 1, 8, 8, 128>}, {transform_indices = @transform_1, window_bounds = array<i64: 1, 8, 8, 128>}, {transform_indices = @transform_2, window_bounds = array<i64: 1, 1, 128>}]} {
    %cst = arith.constant 0.000000e+00 : f32
    %0 = vector.broadcast %cst : f32 to vector<8x8x128xf32>
    %cst_0 = arith.constant 0.000000e+00 : f32
    %1 = vector.broadcast %cst_0 : f32 to vector<8x128xf32>
    %c0 = arith.constant 0 : index
    %c0_1 = arith.constant 0 : index
    %c0_2 = arith.constant 0 : index
    %c0_3 = arith.constant 0 : index
    %2 = vector.load %arg1[%c0, %c0_1, %c0_2, %c0_3] : memref<1x8x8x128xf32, #tpu.memory_space<vmem>>, vector<1x1x8x128xf32>
    %3 = vector.shape_cast %2 : vector<1x1x8x128xf32> to vector<8x128xf32>
    %c0_4 = arith.constant 0 : index
    %c0_5 = arith.constant 0 : index
    %c0_6 = arith.constant 0 : index
    %c0_7 = arith.constant 0 : index
    %4 = vector.load %arg2[%c0_4, %c0_5, %c0_6, %c0_7] : memref<1x8x8x128xf32, #tpu.memory_space<vmem>>, vector<1x1x8x128xf32>
    %5 = vector.shape_cast %4 : vector<1x1x8x128xf32> to vector<8x128xf32>
    %6 = vector.shape_cast %3 : vector<8x128xf32> to vector<8x1x128xf32>
    %7 = vector.shape_cast %5 : vector<8x128xf32> to vector<1x8x128xf32>
    %8 = vector.broadcast %6 : vector<8x1x128xf32> to vector<8x8x128xf32>
    %9 = vector.broadcast %7 : vector<1x8x128xf32> to vector<8x8x128xf32>
    %10 = arith.subf %8, %9 : vector<8x8x128xf32>
    %11 = arith.mulf %10, %10 : vector<8x8x128xf32>
    %12 = arith.addf %0, %11 : vector<8x8x128xf32>
    %13 = arith.subf %3, %5 : vector<8x128xf32>
    %14 = arith.mulf %13, %13 : vector<8x128xf32>
    %15 = arith.addf %1, %14 : vector<8x128xf32>
    %c0_8 = arith.constant 0 : index
    %c1 = arith.constant 1 : index
    %c0_9 = arith.constant 0 : index
    %c0_10 = arith.constant 0 : index
    %16 = vector.load %arg1[%c0_8, %c1, %c0_9, %c0_10] : memref<1x8x8x128xf32, #tpu.memory_space<vmem>>, vector<1x1x8x128xf32>
    %17 = vector.shape_cast %16 : vector<1x1x8x128xf32> to vector<8x128xf32>
    %c0_11 = arith.constant 0 : index
    %c1_12 = arith.constant 1 : index
    %c0_13 = arith.constant 0 : index
    %c0_14 = arith.constant 0 : index
    %18 = vector.load %arg2[%c0_11, %c1_12, %c0_13, %c0_14] : memref<1x8x8x128xf32, #tpu.memory_space<vmem>>, vector<1x1x8x128xf32>
    %19 = vector.shape_cast %18 : vector<1x1x8x128xf32> to vector<8x128xf32>
    %20 = vector.shape_cast %17 : vector<8x128xf32> to vector<8x1x128xf32>
    %21 = vector.shape_cast %19 : vector<8x128xf32> to vector<1x8x128xf32>
    %22 = vector.broadcast %20 : vector<8x1x128xf32> to vector<8x8x128xf32>
    %23 = vector.broadcast %21 : vector<1x8x128xf32> to vector<8x8x128xf32>
    %24 = arith.subf %22, %23 : vector<8x8x128xf32>
    %25 = arith.mulf %24, %24 : vector<8x8x128xf32>
    %26 = arith.addf %12, %25 : vector<8x8x128xf32>
    %27 = arith.subf %17, %19 : vector<8x128xf32>
    %28 = arith.mulf %27, %27 : vector<8x128xf32>
    %29 = arith.addf %15, %28 : vector<8x128xf32>
    %c0_15 = arith.constant 0 : index
    %c2 = arith.constant 2 : index
    %c0_16 = arith.constant 0 : index
    %c0_17 = arith.constant 0 : index
    %30 = vector.load %arg1[%c0_15, %c2, %c0_16, %c0_17] : memref<1x8x8x128xf32, #tpu.memory_space<vmem>>, vector<1x1x8x128xf32>
    %31 = vector.shape_cast %30 : vector<1x1x8x128xf32> to vector<8x128xf32>
    %c0_18 = arith.constant 0 : index
    %c2_19 = arith.constant 2 : index
    %c0_20 = arith.constant 0 : index
    %c0_21 = arith.constant 0 : index
    %32 = vector.load %arg2[%c0_18, %c2_19, %c0_20, %c0_21] : memref<1x8x8x128xf32, #tpu.memory_space<vmem>>, vector<1x1x8x128xf32>
    %33 = vector.shape_cast %32 : vector<1x1x8x128xf32> to vector<8x128xf32>
    %34 = vector.shape_cast %31 : vector<8x128xf32> to vector<8x1x128xf32>
    %35 = vector.shape_cast %33 : vector<8x128xf32> to vector<1x8x128xf32>
    %36 = vector.broadcast %34 : vector<8x1x128xf32> to vector<8x8x128xf32>
    %37 = vector.broadcast %35 : vector<1x8x128xf32> to vector<8x8x128xf32>
    %38 = arith.subf %36, %37 : vector<8x8x128xf32>
    %39 = arith.mulf %38, %38 : vector<8x8x128xf32>
    %40 = arith.addf %26, %39 : vector<8x8x128xf32>
    %41 = arith.subf %31, %33 : vector<8x128xf32>
    %42 = arith.mulf %41, %41 : vector<8x128xf32>
    %43 = arith.addf %29, %42 : vector<8x128xf32>
    %c0_22 = arith.constant 0 : index
    %c3 = arith.constant 3 : index
    %c0_23 = arith.constant 0 : index
    %c0_24 = arith.constant 0 : index
    %44 = vector.load %arg1[%c0_22, %c3, %c0_23, %c0_24] : memref<1x8x8x128xf32, #tpu.memory_space<vmem>>, vector<1x1x8x128xf32>
    %45 = vector.shape_cast %44 : vector<1x1x8x128xf32> to vector<8x128xf32>
    %c0_25 = arith.constant 0 : index
    %c3_26 = arith.constant 3 : index
    %c0_27 = arith.constant 0 : index
    %c0_28 = arith.constant 0 : index
    %46 = vector.load %arg2[%c0_25, %c3_26, %c0_27, %c0_28] : memref<1x8x8x128xf32, #tpu.memory_space<vmem>>, vector<1x1x8x128xf32>
    %47 = vector.shape_cast %46 : vector<1x1x8x128xf32> to vector<8x128xf32>
    %48 = vector.shape_cast %45 : vector<8x128xf32> to vector<8x1x128xf32>
    %49 = vector.shape_cast %47 : vector<8x128xf32> to vector<1x8x128xf32>
    %50 = vector.broadcast %48 : vector<8x1x128xf32> to vector<8x8x128xf32>
    %51 = vector.broadcast %49 : vector<1x8x128xf32> to vector<8x8x128xf32>
    %52 = arith.subf %50, %51 : vector<8x8x128xf32>
    %53 = arith.mulf %52, %52 : vector<8x8x128xf32>
    %54 = arith.addf %40, %53 : vector<8x8x128xf32>
    %55 = arith.subf %45, %47 : vector<8x128xf32>
    %56 = arith.mulf %55, %55 : vector<8x128xf32>
    %57 = arith.addf %43, %56 : vector<8x128xf32>
    %c0_29 = arith.constant 0 : index
    %c4 = arith.constant 4 : index
    %c0_30 = arith.constant 0 : index
    %c0_31 = arith.constant 0 : index
    %58 = vector.load %arg1[%c0_29, %c4, %c0_30, %c0_31] : memref<1x8x8x128xf32, #tpu.memory_space<vmem>>, vector<1x1x8x128xf32>
    %59 = vector.shape_cast %58 : vector<1x1x8x128xf32> to vector<8x128xf32>
    %c0_32 = arith.constant 0 : index
    %c4_33 = arith.constant 4 : index
    %c0_34 = arith.constant 0 : index
    %c0_35 = arith.constant 0 : index
    %60 = vector.load %arg2[%c0_32, %c4_33, %c0_34, %c0_35] : memref<1x8x8x128xf32, #tpu.memory_space<vmem>>, vector<1x1x8x128xf32>
    %61 = vector.shape_cast %60 : vector<1x1x8x128xf32> to vector<8x128xf32>
    %62 = vector.shape_cast %59 : vector<8x128xf32> to vector<8x1x128xf32>
    %63 = vector.shape_cast %61 : vector<8x128xf32> to vector<1x8x128xf32>
    %64 = vector.broadcast %62 : vector<8x1x128xf32> to vector<8x8x128xf32>
    %65 = vector.broadcast %63 : vector<1x8x128xf32> to vector<8x8x128xf32>
    %66 = arith.subf %64, %65 : vector<8x8x128xf32>
    %67 = arith.mulf %66, %66 : vector<8x8x128xf32>
    %68 = arith.addf %54, %67 : vector<8x8x128xf32>
    %69 = arith.subf %59, %61 : vector<8x128xf32>
    %70 = arith.mulf %69, %69 : vector<8x128xf32>
    %71 = arith.addf %57, %70 : vector<8x128xf32>
    %c0_36 = arith.constant 0 : index
    %c5 = arith.constant 5 : index
    %c0_37 = arith.constant 0 : index
    %c0_38 = arith.constant 0 : index
    %72 = vector.load %arg1[%c0_36, %c5, %c0_37, %c0_38] : memref<1x8x8x128xf32, #tpu.memory_space<vmem>>, vector<1x1x8x128xf32>
    %73 = vector.shape_cast %72 : vector<1x1x8x128xf32> to vector<8x128xf32>
    %c0_39 = arith.constant 0 : index
    %c5_40 = arith.constant 5 : index
    %c0_41 = arith.constant 0 : index
    %c0_42 = arith.constant 0 : index
    %74 = vector.load %arg2[%c0_39, %c5_40, %c0_41, %c0_42] : memref<1x8x8x128xf32, #tpu.memory_space<vmem>>, vector<1x1x8x128xf32>
    %75 = vector.shape_cast %74 : vector<1x1x8x128xf32> to vector<8x128xf32>
    %76 = vector.shape_cast %73 : vector<8x128xf32> to vector<8x1x128xf32>
    %77 = vector.shape_cast %75 : vector<8x128xf32> to vector<1x8x128xf32>
    %78 = vector.broadcast %76 : vector<8x1x128xf32> to vector<8x8x128xf32>
    %79 = vector.broadcast %77 : vector<1x8x128xf32> to vector<8x8x128xf32>
    %80 = arith.subf %78, %79 : vector<8x8x128xf32>
    %81 = arith.mulf %80, %80 : vector<8x8x128xf32>
    %82 = arith.addf %68, %81 : vector<8x8x128xf32>
    %83 = arith.subf %73, %75 : vector<8x128xf32>
    %84 = arith.mulf %83, %83 : vector<8x128xf32>
    %85 = arith.addf %71, %84 : vector<8x128xf32>
    %c0_43 = arith.constant 0 : index
    %c6 = arith.constant 6 : index
    %c0_44 = arith.constant 0 : index
    %c0_45 = arith.constant 0 : index
    %86 = vector.load %arg1[%c0_43, %c6, %c0_44, %c0_45] : memref<1x8x8x128xf32, #tpu.memory_space<vmem>>, vector<1x1x8x128xf32>
    %87 = vector.shape_cast %86 : vector<1x1x8x128xf32> to vector<8x128xf32>
    %c0_46 = arith.constant 0 : index
    %c6_47 = arith.constant 6 : index
    %c0_48 = arith.constant 0 : index
    %c0_49 = arith.constant 0 : index
    %88 = vector.load %arg2[%c0_46, %c6_47, %c0_48, %c0_49] : memref<1x8x8x128xf32, #tpu.memory_space<vmem>>, vector<1x1x8x128xf32>
    %89 = vector.shape_cast %88 : vector<1x1x8x128xf32> to vector<8x128xf32>
    %90 = vector.shape_cast %87 : vector<8x128xf32> to vector<8x1x128xf32>
    %91 = vector.shape_cast %89 : vector<8x128xf32> to vector<1x8x128xf32>
    %92 = vector.broadcast %90 : vector<8x1x128xf32> to vector<8x8x128xf32>
    %93 = vector.broadcast %91 : vector<1x8x128xf32> to vector<8x8x128xf32>
    %94 = arith.subf %92, %93 : vector<8x8x128xf32>
    %95 = arith.mulf %94, %94 : vector<8x8x128xf32>
    %96 = arith.addf %82, %95 : vector<8x8x128xf32>
    %97 = arith.subf %87, %89 : vector<8x128xf32>
    %98 = arith.mulf %97, %97 : vector<8x128xf32>
    %99 = arith.addf %85, %98 : vector<8x128xf32>
    %c0_50 = arith.constant 0 : index
    %c7 = arith.constant 7 : index
    %c0_51 = arith.constant 0 : index
    %c0_52 = arith.constant 0 : index
    %100 = vector.load %arg1[%c0_50, %c7, %c0_51, %c0_52] : memref<1x8x8x128xf32, #tpu.memory_space<vmem>>, vector<1x1x8x128xf32>
    %101 = vector.shape_cast %100 : vector<1x1x8x128xf32> to vector<8x128xf32>
    %c0_53 = arith.constant 0 : index
    %c7_54 = arith.constant 7 : index
    %c0_55 = arith.constant 0 : index
    %c0_56 = arith.constant 0 : index
    %102 = vector.load %arg2[%c0_53, %c7_54, %c0_55, %c0_56] : memref<1x8x8x128xf32, #tpu.memory_space<vmem>>, vector<1x1x8x128xf32>
    %103 = vector.shape_cast %102 : vector<1x1x8x128xf32> to vector<8x128xf32>
    %104 = vector.shape_cast %101 : vector<8x128xf32> to vector<8x1x128xf32>
    %105 = vector.shape_cast %103 : vector<8x128xf32> to vector<1x8x128xf32>
    %106 = vector.broadcast %104 : vector<8x1x128xf32> to vector<8x8x128xf32>
    %107 = vector.broadcast %105 : vector<1x8x128xf32> to vector<8x8x128xf32>
    %108 = arith.subf %106, %107 : vector<8x8x128xf32>
    %109 = arith.mulf %108, %108 : vector<8x8x128xf32>
    %110 = arith.addf %96, %109 : vector<8x8x128xf32>
    %111 = arith.subf %101, %103 : vector<8x128xf32>
    %112 = arith.mulf %111, %111 : vector<8x128xf32>
    %113 = arith.addf %99, %112 : vector<8x128xf32>
    %cst_57 = arith.constant -3.906250e-02 : f32
    %114 = vector.broadcast %cst_57 : f32 to vector<8x8x128xf32>
    %115 = arith.mulf %110, %114 : vector<8x8x128xf32>
    %cst_58 = arith.constant -3.906250e-02 : f32
    %116 = vector.broadcast %cst_58 : f32 to vector<8x128xf32>
    %117 = arith.mulf %113, %116 : vector<8x128xf32>
    %cst_59 = arith.constant dense<0xFF800000> : vector<8x128xf32>
    %118 = vector.multi_reduction <maximumf>, %115, %cst_59 [1] : vector<8x8x128xf32> to vector<8x128xf32>
    %119 = vector.shape_cast %118 : vector<8x128xf32> to vector<8x1x128xf32>
    %120 = vector.broadcast %119 : vector<8x1x128xf32> to vector<8x8x128xf32>
    %121 = arith.subf %115, %120 : vector<8x8x128xf32>
    %122 = math.exp %121 : vector<8x8x128xf32>
    %cst_60 = arith.constant dense<0.000000e+00> : vector<8x128xf32>
    %123 = vector.multi_reduction <add>, %122, %cst_60 [1] : vector<8x8x128xf32> to vector<8x128xf32>
    %124 = math.log %123 : vector<8x128xf32>
    %125 = arith.addf %118, %124 : vector<8x128xf32>
    %126 = arith.subf %125, %117 : vector<8x128xf32>
    %cst_61 = arith.constant dense<0.000000e+00> : vector<128xf32>
    %127 = vector.multi_reduction <add>, %126, %cst_61 [0] : vector<8x128xf32> to vector<128xf32>
    %128 = vector.shape_cast %127 : vector<128xf32> to vector<1x128xf32>
    %cst_62 = arith.constant 8.000000e+00 : f32
    %129 = vector.broadcast %cst_62 : f32 to vector<1x128xf32>
    %130 = arith.divf %128, %129 : vector<1x128xf32>
    %c0_63 = arith.constant 0 : index
    %c0_64 = arith.constant 0 : index
    %c0_65 = arith.constant 0 : index
    %131 = vector.load %arg3[%c0_63, %c0_64, %c0_65] : memref<1x1x128xf32, #tpu.memory_space<vmem>>, vector<1x1x128xf32>
    %132 = vector.shape_cast %131 : vector<1x1x128xf32> to vector<1x128xf32>
    %133 = vector.shape_cast %130 : vector<1x128xf32> to vector<1x1x128xf32>
    tpu.vector_store %arg3[%c0_63, %c0_64, %c0_65], %133 {strides = array<i32>} : memref<1x1x128xf32, #tpu.memory_space<vmem>>, vector<1x1x128xf32>,
    return
  }
  func.func @transform_0(%arg0: i32) -> (i32, i32, i32, i32) {
    %c0_i32 = arith.constant 0 : i32
    %c0_i32_0 = arith.constant 0 : i32
    %c0_i32_1 = arith.constant 0 : i32
    %c0_i32_2 = arith.constant 0 : i32
    return %arg0, %c0_i32, %c0_i32_0, %c0_i32_1 : i32, i32, i32, i32
  }
  func.func @transform_1(%arg0: i32) -> (i32, i32, i32, i32) {
    %c0_i32 = arith.constant 0 : i32
    %c0_i32_0 = arith.constant 0 : i32
    %c0_i32_1 = arith.constant 0 : i32
    %c0_i32_2 = arith.constant 0 : i32
    return %arg0, %c0_i32, %c0_i32_0, %c0_i32_1 : i32, i32, i32, i32
  }
  func.func @transform_2(%arg0: i32) -> (i32, i32, i32) {
    %c0_i32 = arith.constant 0 : i32
    %c0_i32_0 = arith.constant 0 : i32
    %c0_i32_1 = arith.constant 0 : i32
    return %arg0, %c0_i32, %c0_i32_0 : i32, i32, i32
  }
}

</mosaic_0001>

<bundles_post_ra>
// kernel: tpu_custom_call.1
= control target key start
LH: loop header
LB: loop body
LE: loop exit
PB: predicated region body
PF: predicated region fallthrough
CT: control target
= control target key end

     0   :  { %7 = vsyncpa [#allocation3], 0  ;;  %s1720_s0 = inlined_call_operand.hbm [shape: f32[1,8,8,128], index: 0, kind: input, shape index: {}]   ;;  %s1721_s1 = inlined_call_operand.hbm [shape: f32[1,8,8,128], index: 1, kind: input, shape index: {}]   ;;  %s1722_s2 = inlined_call_operand.hbm [shape: f32[1,1,128], index: 2, kind: output, shape index: {}]  }
   0x1   :  { %8 = vsyncpa [#allocation6], 0 }
   0x2   :  { %9 = vsyncpa [#allocation4], 0  ;;  %s1356_s9 = smov [#allocation2]   ;;  %s1284_s13 = scalar_lea.hbm %s1720_s0, 1024 }
   0x3   :  { %s15_s10 = sshll.u32 %s1356_s9, 4  ;;  %p1285_p0 = scmp.ne.s32.totalorder %s1720_s0, %s1284_s13  ;;  %s16_s10 = int_to_ptr.vmem [resolvable:$true] %s15_s10 }
   0x4   :  { %p1288_p1 = scmp.lt.u32.totalorder %s1284_s13, %s1720_s0 }
   0x6   :  { %p1290_p2 = pnand %p1288_p1, %p1285_p0 }
   0x8   :  { %1293 = shalt.err (!%p1290_p2)
}
   0x9   :  { %s1294_s18 = scalar_lea.vmem %s16_s10, 1024  ;;  %p1299_p4 = scmp.lt.s32.totalorder %s16_s10, %s16_s10 }
   0xa   :  { %p1295_p3 = scmp.ne.s32.totalorder %s16_s10, %s1294_s18  ;;  %p1300_p5 = scmp.lt.s32.totalorder %s1294_s18, %s1294_s18 }
   0xc   :  { %p1301_p6 = por %p1300_p5, %p1299_p4 }
   0xe   :  { %p1302_p7 = pnand %p1301_p6, %p1295_p3 }
  0x10   :  { %1305 = shalt.err (!%p1302_p7)
}
  0x11   :  { %s1357_s19 = smov 128   ;;  %s1358_s20 = smov 8  }
  0x12   :  { %21 = dma.hbm_to_vmem [thread:$0]  %s1720_s0, 1024, %s16_s10, [#allocation3], %s1357_s19, %s1357_s19, %s1358_s20  }
  0x13   :  { %s1359_s23 = smov [#allocation5]   ;;  %s1306_s27 = scalar_lea.hbm %s1721_s1, 1024 }
  0x14   :  { %s27_s24 = sshll.u32 %s1359_s23, 4  ;;  %p1307_p8 = scmp.ne.s32.totalorder %s1721_s1, %s1306_s27  ;;  %s28_s24 = int_to_ptr.vmem [resolvable:$true] %s27_s24 }
  0x15   :  { %p1310_p9 = scmp.lt.u32.totalorder %s1306_s27, %s1721_s1 }
  0x17   :  { %p1312_p10 = pnand %p1310_p9, %p1307_p8 }
  0x19   :  { %1315 = shalt.err (!%p1312_p10)
}
  0x1a   :  { %s1316_s4 = scalar_lea.vmem %s28_s24, 1024  ;;  %p1321_p12 = scmp.lt.s32.totalorder %s28_s24, %s28_s24 }
  0x1b   :  { %p1317_p11 = scmp.ne.s32.totalorder %s28_s24, %s1316_s4  ;;  %p1322_p13 = scmp.lt.s32.totalorder %s1316_s4, %s1316_s4 }
  0x1d   :  { %p1323_p0 = por %p1322_p13, %p1321_p12 }
  0x1f   :  { %p1324_p1 = pnand %p1323_p0, %p1317_p11 }
  0x21   :  { %1327 = shalt.err (!%p1324_p1)
}
  0x22   :  { %33 = dma.hbm_to_vmem [thread:$0]  %s1721_s1, 1024, %s28_s24, [#allocation6], %s1357_s19, %s1357_s19, %s1358_s20  }
  0x23   :  { %1350 = dma.done.wait [#allocation3], 1024  }
  0x24   :  { %1351 = vsyncadd [#allocation3], 4294966272 }
  0x25   :  { %1352 = dma.done.wait [#allocation6], 1024  }
  0x26   :  { %1353 = vsyncadd [#allocation6], 4294966272  ;;  %v47_v0 = vlaneseq  ;;  %v1360_v1 = vmov 1966171168   ;;  %v40_v6 = vld [vmem:[#allocation2] sm:$0xff]  ;;  %v160_v7 = vld [vmem:[#allocation2 + $0x8] sm:$0xff] }
  0x27   :  { %v45_v2 = vunpack.c.l.s4 %v1360_v1  ;;  %v43_v8 = vcombine.high %v40_v6, %v40_v6  ;;  %v164_v10 = vcombine.high %v160_v7, %v160_v7  ;;  %v41_v21 = vld [vmem:[#allocation5] sm:$0xff]  ;;  %v1414_v29 = vld [vmem:[#allocation2 + $0x10] sm:$0xff]  ;;  %v162_v31 = vld [vmem:[#allocation5 + $0x8] sm:$0xff]  ;;  %vm1192_vm0 = vcmask 1041409   ;;  %s1361_s1 = smov [#allocation7]  }
  0x28   :  { %v48_v3 = vshrl.u32 %v47_v0, 7  ;;  %v156_v25 = vsub.f32 %v40_v6, %v41_v21  ;;  %v1422_v38 = vsub.f32 %v160_v7, %v162_v31  ;;  %v285_v41 = vcombine.high %v1414_v29, %v1414_v29  ;;  %s1228_s6 = sshll.u32 %s1361_s1, 4  ;;  %s1229_s6 = int_to_ptr.vmem [resolvable:$true] %s1228_s6 }
  0x29   :  { %v46_v4 = vunpack.c.0.s8 %v45_v2  ;;  %vm1195_vm1 = vcmask 1042434   ;;  %vm1198_vm2 = vcmask 1043459   ;;  %vm1201_vm3 = vcmask 1044484   ;;  %s1328_s7 = scalar_lea.vmem %s1229_s6, 16  ;;  %s1332_s8 = scalar_lea.vmem %s1229_s6, 32 }
  0x2a   :  { %v1411_v24 = vsub.s32 0, %v48_v3  ;;  %v1424_v39 = vmul.f32 %v156_v25, %v156_v25  ;;  %vm1204_vm4 = vcmask 1045509   ;;  %vm1207_vm5 = vcmask 1046534   ;;  %p1329_p2 = scmp.ne.s32.totalorder %s1229_s6, %s1328_s7  ;;  %p1333_p3 = scmp.lt.s32.totalorder %s1229_s6, %s1229_s6 }
  0x2b   :  { %v1401_v5 = vsub.s32 %v46_v4, %v48_v3  ;;  %vm1210_vm6 = vcmask 1047559   ;;  %p1334_p4 = scmp.lt.s32.totalorder %s1332_s8, %s1328_s7 }
  0x2d   :  { %v50_v9 = vrot.slane %v40_v6, %v1401_v5  ;;  %v171_v11 = vrot.slane %v160_v7, %v1401_v5  ;;  %v57_v12 = vrot.slane %v43_v8, %v1401_v5  ;;  %v178_v15 = vrot.slane %v164_v10, %v1401_v5  ;;  %p1335_p5 = por %p1334_p4, %p1333_p3 }
  0x2e   :  { %v292_v42 = vrot.slane %v1414_v29, %v1401_v5 }
  0x2f   :  { %v58_v13 = vcombine.high %v50_v9, %v50_v9  ;;  %v66_v14 = vrot.slane %v50_v9, %v1401_v5  ;;  %v59_v16 = vcombine.high %v57_v12, %v57_v12  ;;  %v73_v17 = vrot.slane %v57_v12, %v1401_v5  ;;  %p1336_p6 = pnand %p1335_p5, %p1329_p2 }
  0x30   :  { %v179_v19 = vcombine.high %v171_v11, %v171_v11  ;;  %v180_v20 = vcombine.high %v178_v15, %v178_v15  ;;  %v187_v26 = vrot.slane %v171_v11, %v1401_v5  ;;  %v194_v32 = vrot.slane %v178_v15, %v1401_v5 }
  0x31   :  { %v80_v18 = vrot.slane %v58_v13, %v1401_v5  ;;  %v87_v22 = vrot.slane %v59_v16, %v1401_v5  ;;  %v88_v23 = vcombine.high %v66_v14, %v66_v14  ;;  %v89_v27 = vcombine.high %v73_v17, %v73_v17 }
  0x32   :  { %v201_v33 = vrot.slane %v179_v19, %v1401_v5  ;;  %v208_v34 = vrot.slane %v180_v20, %v1401_v5  ;;  %v95_v35 = vrot.slane %v66_v14, %v1411_v24  ;;  %v209_v40 = vcombine.high %v187_v26, %v187_v26 }
  0x33   :  { %v90_v28 = vcombine.high %v80_v18, %v80_v18  ;;  %v91_v30 = vcombine.high %v87_v22, %v87_v22  ;;  %v99_v36 = vrot.slane %v80_v18, %v1411_v24  ;;  %v103_v37 = vrot.slane %v88_v23, %v1411_v24 }
  0x34   :  { %v111_v44 = vrot.slane %v73_v17, %v1411_v24  ;;  %v115_v45 = vrot.slane %v87_v22, %v1411_v24  ;;  %v119_v46 = vrot.slane %v89_v27, %v1411_v24  ;;  %v210_v48 = vcombine.high %v194_v32, %v194_v32 }
  0x35   :  { %v107_v43 = vrot.slane %v90_v28, %v1411_v24  ;;  %v123_v47 = vrot.slane %v91_v30, %v1411_v24  ;;  %v211_v49 = vcombine.high %v201_v33, %v201_v33  ;;  %v212_v50 = vcombine.high %v208_v34, %v208_v34 }
  0x36   :  { %v132_v51 = vsub.f32 %v95_v35, %v41_v21  ;;  %v133_v52 = vsub.f32 %v99_v36, %v41_v21  ;;  %v134_v53 = vsub.f32 %v103_v37, %v41_v21  ;;  %v216_v54 = vrot.slane %v187_v26, %v1411_v24  ;;  %v1447_v35 = vld [vmem:[#allocation2 + $0x18] sm:$0xff] }
  0x37   :  { %v220_v55 = vrot.slane %v201_v33, %v1411_v24  ;;  %v224_v56 = vrot.slane %v209_v40, %v1411_v24  ;;  %v228_v57 = vrot.slane %v211_v49, %v1411_v24  ;;  %v232_v58 = vrot.slane %v194_v32, %v1411_v24 }
  0x38   :  { %v135_v59 = vsub.f32 %v107_v43, %v41_v21  ;;  %v136_v60 = vsub.f32 %v111_v44, %v41_v21  ;;  %v137_v61 = vsub.f32 %v115_v45, %v41_v21  ;;  %v138_v62 = vsub.f32 %v119_v46, %v41_v21 }
  0x39   :  { %v139_v63 = vsub.f32 %v123_v47, %v41_v21  ;;  %v236_v0 = vrot.slane %v208_v34, %v1411_v24  ;;  %v240_v1 = vrot.slane %v210_v48, %v1411_v24  ;;  %v244_v2 = vrot.slane %v212_v50, %v1411_v24 }
  0x3a   :  { %v140_v3 = vmul.f32 %v132_v51, %v132_v51  ;;  %v141_v4 = vmul.f32 %v133_v52, %v133_v52  ;;  %v142_v6 = vmul.f32 %v134_v53, %v134_v53  ;;  %v253_v7 = vsub.f32 %v216_v54, %v162_v31 }
  0x3b   :  { %v254_v8 = vsub.f32 %v220_v55, %v162_v31  ;;  %v255_v9 = vsub.f32 %v224_v56, %v162_v31  ;;  %v256_v10 = vsub.f32 %v228_v57, %v162_v31  ;;  %v257_v11 = vsub.f32 %v232_v58, %v162_v31 }
  0x3c   :  { %v143_v12 = vmul.f32 %v135_v59, %v135_v59  ;;  %v144_v13 = vmul.f32 %v136_v60, %v136_v60  ;;  %v145_v14 = vmul.f32 %v137_v61, %v137_v61  ;;  %v146_v15 = vmul.f32 %v138_v62, %v138_v62 }
  0x3d   :  { %v147_v16 = vmul.f32 %v139_v63, %v139_v63  ;;  %v258_v17 = vsub.f32 %v236_v0, %v162_v31  ;;  %v259_v18 = vsub.f32 %v240_v1, %v162_v31  ;;  %v260_v19 = vsub.f32 %v244_v2, %v162_v31 }
  0x3e   :  { %v261_v20 = vmul.f32 %v253_v7, %v253_v7  ;;  %v299_v21 = vrot.slane %v285_v41, %v1401_v5  ;;  %v300_v22 = vcombine.high %v292_v42, %v292_v42  ;;  %v308_v23 = vrot.slane %v292_v42, %v1401_v5  ;;  %v1452_v41 = vld [vmem:[#allocation5 + $0x10] sm:$0xff] }
  0x3f   :  { %v262_v25 = vmul.f32 %v254_v8, %v254_v8  ;;  %v263_v26 = vmul.f32 %v255_v9, %v255_v9  ;;  %v264_v27 = vmul.f32 %v256_v10, %v256_v10  ;;  %v265_v28 = vmul.f32 %v257_v11, %v257_v11 }
  0x40   :  { %v301_v30 = vcombine.high %v299_v21, %v299_v21  ;;  %v315_v32 = vrot.slane %v299_v21, %v1401_v5  ;;  %v322_v33 = vrot.slane %v300_v22, %v1401_v5  ;;  %v330_v34 = vcombine.high %v308_v23, %v308_v23 }
  0x41   :  { %v266_v36 = vmul.f32 %v258_v17, %v258_v17  ;;  %v267_v31 = vmul.f32 %v259_v18, %v259_v18  ;;  %v337_v37 = vrot.slane %v308_v23, %v1411_v24  ;;  %v406_v40 = vcombine.high %v1447_v35, %v1447_v35 }
  0x42   :  { %v329_v42 = vrot.slane %v301_v30, %v1401_v5  ;;  %v331_v43 = vcombine.high %v315_v32, %v315_v32  ;;  %v332_v44 = vcombine.high %v322_v33, %v322_v33  ;;  %v341_v45 = vrot.slane %v322_v33, %v1411_v24 }
  0x43   :  { %v345_v46 = vrot.slane %v330_v34, %v1411_v24  ;;  %v353_v47 = vrot.slane %v315_v32, %v1411_v24  ;;  %v374_v48 = vsub.f32 %v337_v37, %v1452_v41  ;;  %v413_v49 = vrot.slane %v1447_v35, %v1401_v5 }
  0x44   :  { %v333_v50 = vcombine.high %v329_v42, %v329_v42  ;;  %v349_v51 = vrot.slane %v332_v44, %v1411_v24  ;;  %v357_v52 = vrot.slane %v329_v42, %v1411_v24  ;;  %v361_v53 = vrot.slane %v331_v43, %v1411_v24  ;;  %v1487_v42 = vld [vmem:[#allocation2 + $0x20] sm:$0xff] }
  0x45   :  { %v268_v54 = vmul.f32 %v260_v19, %v260_v19  ;;  %v269_v55 = vadd.f32 %v261_v20, %v140_v3  ;;  %v270_v56 = vadd.f32 %v262_v25, %v141_v4  ;;  %v420_v57 = vrot.slane %v406_v40, %v1401_v5 }
  0x46   :  { %v375_v58 = vsub.f32 %v341_v45, %v1452_v41  ;;  %v376_v59 = vsub.f32 %v345_v46, %v1452_v41  ;;  %v378_v60 = vsub.f32 %v353_v47, %v1452_v41  ;;  %v382_v61 = vmul.f32 %v374_v48, %v374_v48 }
  0x47   :  { %v271_v62 = vadd.f32 %v263_v26, %v142_v6  ;;  %v272_v63 = vadd.f32 %v264_v27, %v143_v12  ;;  %v273_v0 = vadd.f32 %v265_v28, %v144_v13  ;;  %v421_v1 = vcombine.high %v413_v49, %v413_v49 }
  0x48   :  { %v365_v2 = vrot.slane %v333_v50, %v1411_v24  ;;  %v377_v7 = vsub.f32 %v349_v51, %v1452_v41  ;;  %v379_v3 = vsub.f32 %v357_v52, %v1452_v41  ;;  %v380_v4 = vsub.f32 %v361_v53, %v1452_v41 }
  0x49   :  { %v274_v8 = vadd.f32 %v266_v36, %v145_v14  ;;  %v275_v9 = vadd.f32 %v267_v31, %v146_v15  ;;  %v276_v10 = vadd.f32 %v268_v54, %v147_v16  ;;  %v422_v11 = vcombine.high %v420_v57, %v420_v57  ;;  %v1477_v15 = vld [vmem:[#allocation5 + $0x18] sm:$0xff] }
  0x4a   :  { %v383_v17 = vmul.f32 %v375_v58, %v375_v58  ;;  %v384_v18 = vmul.f32 %v376_v59, %v376_v59  ;;  %v386_v19 = vmul.f32 %v378_v60, %v378_v60  ;;  %v390_v20 = vadd.f32 %v382_v61, %v269_v55 }
  0x4b   :  { %v429_v6 = vrot.slane %v413_v49, %v1401_v5  ;;  %v436_v12 = vrot.slane %v420_v57, %v1401_v5  ;;  %v443_v13 = vrot.slane %v421_v1, %v1401_v5  ;;  %v450_v21 = vrot.slane %v422_v11, %v1401_v5 }
  0x4c   :  { %v381_v22 = vsub.f32 %v365_v2, %v1452_v41  ;;  %v385_v23 = vmul.f32 %v377_v7, %v377_v7  ;;  %v387_v25 = vmul.f32 %v379_v3, %v379_v3  ;;  %v388_v14 = vmul.f32 %v380_v4, %v380_v4 }
  0x4d   :  { %v451_v16 = vcombine.high %v429_v6, %v429_v6  ;;  %v452_v26 = vcombine.high %v436_v12, %v436_v12  ;;  %v453_v27 = vcombine.high %v443_v13, %v443_v13  ;;  %v454_v28 = vcombine.high %v450_v21, %v450_v21 }
  0x4e   :  { %v458_v30 = vrot.slane %v429_v6, %v1411_v24  ;;  %v462_v32 = vrot.slane %v443_v13, %v1411_v24  ;;  %v474_v33 = vrot.slane %v436_v12, %v1411_v24  ;;  %v478_v34 = vrot.slane %v450_v21, %v1411_v24  ;;  %v1503_v6 = vld [vmem:[#allocation2 + $0x28] sm:$0xff] }
  0x4f   :  { %v466_v36 = vrot.slane %v451_v16, %v1411_v24  ;;  %v470_v31 = vrot.slane %v453_v27, %v1411_v24  ;;  %v482_v37 = vrot.slane %v452_v26, %v1411_v24  ;;  %v486_v40 = vrot.slane %v454_v28, %v1411_v24 }
  0x50   :  { %v389_v43 = vmul.f32 %v381_v22, %v381_v22  ;;  %v391_v44 = vadd.f32 %v383_v17, %v270_v56  ;;  %v495_v45 = vsub.f32 %v458_v30, %v1477_v15  ;;  %v496_v46 = vsub.f32 %v462_v32, %v1477_v15 }
  0x51   :  { %v497_v47 = vsub.f32 %v466_v36, %v1477_v15  ;;  %v498_v48 = vsub.f32 %v470_v31, %v1477_v15  ;;  %v499_v49 = vsub.f32 %v474_v33, %v1477_v15  ;;  %v500_v50 = vsub.f32 %v478_v34, %v1477_v15 }
  0x52   :  { %v392_v51 = vadd.f32 %v384_v18, %v271_v62  ;;  %v501_v52 = vsub.f32 %v482_v37, %v1477_v15  ;;  %v527_v53 = vcombine.high %v1487_v42, %v1487_v42  ;;  %v534_v54 = vrot.slane %v1487_v42, %v1401_v5 }
  0x53   :  { %v394_v55 = vadd.f32 %v386_v19, %v273_v0  ;;  %v502_v56 = vsub.f32 %v486_v40, %v1477_v15  ;;  %v503_v57 = vmul.f32 %v495_v45, %v495_v45  ;;  %v504_v58 = vmul.f32 %v496_v46, %v496_v46 }
  0x54   :  { %v393_v59 = vadd.f32 %v385_v23, %v272_v63  ;;  %v395_v60 = vadd.f32 %v387_v25, %v274_v8  ;;  %v396_v61 = vadd.f32 %v388_v14, %v275_v9  ;;  %v397_v1 = vadd.f32 %v389_v43, %v276_v10  ;;  %v1512_v14 = vld [vmem:[#allocation5 + $0x20] sm:$0xff] }
  0x55   :  { %v505_v2 = vmul.f32 %v497_v47, %v497_v47  ;;  %v506_v7 = vmul.f32 %v498_v48, %v498_v48  ;;  %v507_v62 = vmul.f32 %v499_v49, %v499_v49  ;;  %v508_v3 = vmul.f32 %v500_v50, %v500_v50 }
  0x56   :  { %v509_v4 = vmul.f32 %v501_v52, %v501_v52  ;;  %v541_v11 = vrot.slane %v527_v53, %v1401_v5  ;;  %v542_v17 = vcombine.high %v534_v54, %v534_v54  ;;  %v550_v18 = vrot.slane %v534_v54, %v1401_v5 }
  0x57   :  { %v510_v0 = vmul.f32 %v502_v56, %v502_v56  ;;  %v511_v19 = vadd.f32 %v503_v57, %v390_v20  ;;  %v512_v12 = vadd.f32 %v504_v58, %v391_v44  ;;  %v648_v63 = vcombine.high %v1503_v6, %v1503_v6 }
  0x58   :  { %v543_v8 = vcombine.high %v541_v11, %v541_v11  ;;  %v557_v9 = vrot.slane %v541_v11, %v1401_v5  ;;  %v564_v10 = vrot.slane %v542_v17, %v1401_v5  ;;  %v572_v13 = vcombine.high %v550_v18, %v550_v18 }
  0x59   :  { %v513_v21 = vadd.f32 %v505_v2, %v392_v51  ;;  %v515_v22 = vadd.f32 %v507_v62, %v394_v55  ;;  %v579_v23 = vrot.slane %v550_v18, %v1411_v24  ;;  %v655_v25 = vrot.slane %v1503_v6, %v1401_v5 }
  0x5a   :  { %v571_v20 = vrot.slane %v543_v8, %v1401_v5  ;;  %v573_v16 = vcombine.high %v557_v9, %v557_v9  ;;  %v574_v26 = vcombine.high %v564_v10, %v564_v10  ;;  %v583_v27 = vrot.slane %v564_v10, %v1411_v24 }
  0x5b   :  { %v587_v28 = vrot.slane %v572_v13, %v1411_v24  ;;  %v595_v30 = vrot.slane %v557_v9, %v1411_v24  ;;  %v616_v32 = vsub.f32 %v579_v23, %v1512_v14  ;;  %v662_v33 = vrot.slane %v648_v63, %v1401_v5 }
  0x5c   :  { %v575_v34 = vcombine.high %v571_v20, %v571_v20  ;;  %v591_v36 = vrot.slane %v574_v26, %v1411_v24  ;;  %v599_v31 = vrot.slane %v571_v20, %v1411_v24  ;;  %v603_v37 = vrot.slane %v573_v16, %v1411_v24 }
  0x5d   :  { %v617_v40 = vsub.f32 %v583_v27, %v1512_v14  ;;  %v618_v43 = vsub.f32 %v587_v28, %v1512_v14  ;;  %v620_v44 = vsub.f32 %v595_v30, %v1512_v14  ;;  %v624_v45 = vmul.f32 %v616_v32, %v616_v32 }
  0x5e   :  { %v607_v46 = vrot.slane %v575_v34, %v1411_v24  ;;  %v619_v47 = vsub.f32 %v591_v36, %v1512_v14  ;;  %v621_v48 = vsub.f32 %v599_v31, %v1512_v14  ;;  %v622_v49 = vsub.f32 %v603_v37, %v1512_v14 }
  0x5f   :  { %v516_v50 = vadd.f32 %v508_v3, %v395_v60  ;;  %v625_v51 = vmul.f32 %v617_v40, %v617_v40  ;;  %v626_v52 = vmul.f32 %v618_v43, %v618_v43  ;;  %v663_v53 = vcombine.high %v655_v25, %v655_v25 }
  0x60   :  { %v514_v54 = vadd.f32 %v506_v7, %v393_v59  ;;  %v623_v55 = vsub.f32 %v607_v46, %v1512_v14  ;;  %v627_v56 = vmul.f32 %v619_v47, %v619_v47  ;;  %v628_v57 = vmul.f32 %v620_v44, %v620_v44  ;;  %v1535_v7 = vld [vmem:[#allocation2 + $0x30] sm:$0xff] }
  0x61   :  { %v517_v58 = vadd.f32 %v509_v4, %v396_v61  ;;  %v518_v2 = vadd.f32 %v510_v0, %v397_v1  ;;  %v632_v62 = vadd.f32 %v624_v45, %v511_v19  ;;  %v664_v11 = vcombine.high %v662_v33, %v662_v33  ;;  %v1539_v4 = vld [vmem:[#allocation5 + $0x28] sm:$0xff] }
  0x62   :  { %v629_v17 = vmul.f32 %v621_v48, %v621_v48  ;;  %v630_v18 = vmul.f32 %v622_v49, %v622_v49  ;;  %v633_v63 = vadd.f32 %v625_v51, %v512_v12  ;;  %v634_v8 = vadd.f32 %v626_v52, %v513_v21 }
  0x63   :  { %v671_v9 = vrot.slane %v655_v25, %v1401_v5  ;;  %v678_v60 = vrot.slane %v662_v33, %v1401_v5  ;;  %v685_v3 = vrot.slane %v663_v53, %v1401_v5  ;;  %v692_v59 = vrot.slane %v664_v11, %v1401_v5 }
  0x64   :  { %v631_v10 = vmul.f32 %v623_v55, %v623_v55  ;;  %v635_v13 = vadd.f32 %v627_v56, %v514_v54  ;;  %v636_v61 = vadd.f32 %v628_v57, %v515_v22  ;;  %v769_v1 = vcombine.high %v1535_v7, %v1535_v7 }
  0x65   :  { %v693_v0 = vcombine.high %v671_v9, %v671_v9  ;;  %v694_v19 = vcombine.high %v678_v60, %v678_v60  ;;  %v695_v12 = vcombine.high %v685_v3, %v685_v3  ;;  %v696_v21 = vcombine.high %v692_v59, %v692_v59 }
  0x66   :  { %v700_v23 = vrot.slane %v671_v9, %v1411_v24  ;;  %v704_v25 = vrot.slane %v685_v3, %v1411_v24  ;;  %v716_v20 = vrot.slane %v678_v60, %v1411_v24  ;;  %v720_v16 = vrot.slane %v692_v59, %v1411_v24 }
  0x67   :  { %v708_v26 = vrot.slane %v693_v0, %v1411_v24  ;;  %v712_v22 = vrot.slane %v695_v12, %v1411_v24  ;;  %v724_v27 = vrot.slane %v694_v19, %v1411_v24  ;;  %v728_v28 = vrot.slane %v696_v21, %v1411_v24 }
  0x68   :  { %v737_v30 = vsub.f32 %v700_v23, %v1539_v4  ;;  %v738_v32 = vsub.f32 %v704_v25, %v1539_v4  ;;  %v741_v33 = vsub.f32 %v716_v20, %v1539_v4  ;;  %v742_v34 = vsub.f32 %v720_v16, %v1539_v4 }
  0x69   :  { %v739_v36 = vsub.f32 %v708_v26, %v1539_v4  ;;  %v740_v31 = vsub.f32 %v712_v22, %v1539_v4  ;;  %v743_v37 = vsub.f32 %v724_v27, %v1539_v4  ;;  %v744_v40 = vsub.f32 %v728_v28, %v1539_v4 }
  0x6a   :  { %v745_v43 = vmul.f32 %v737_v30, %v737_v30  ;;  %v746_v44 = vmul.f32 %v738_v32, %v738_v32  ;;  %v749_v45 = vmul.f32 %v741_v33, %v741_v33  ;;  %v776_v46 = vrot.slane %v1535_v7, %v1401_v5 }
  0x6b   :  { %v637_v47 = vadd.f32 %v629_v17, %v516_v50  ;;  %v747_v48 = vmul.f32 %v739_v36, %v739_v36  ;;  %v748_v49 = vmul.f32 %v740_v31, %v740_v31  ;;  %v750_v51 = vmul.f32 %v742_v34, %v742_v34  ;;  %v1565_v17 = vld [vmem:[#allocation2 + $0x38] sm:$0xff] }
  0x6c   :  { %v278_v52 = vmul.f32 %v1422_v38, %v1422_v38  ;;  %v398_v53 = vsub.f32 %v1414_v29, %v1452_v41  ;;  %v638_v54 = vadd.f32 %v630_v18, %v517_v58  ;;  %v639_v55 = vadd.f32 %v631_v10, %v518_v2 }
  0x6d   :  { %v751_v56 = vmul.f32 %v743_v37, %v743_v37  ;;  %v752_v57 = vmul.f32 %v744_v40, %v744_v40  ;;  %v753_v11 = vadd.f32 %v745_v43, %v632_v62  ;;  %v754_v9 = vadd.f32 %v746_v44, %v633_v63 }
  0x6e   :  { %v757_v60 = vadd.f32 %v749_v45, %v636_v61  ;;  %v783_v3 = vrot.slane %v769_v1, %v1401_v5  ;;  %v784_v59 = vcombine.high %v776_v46, %v776_v46  ;;  %v792_v50 = vrot.slane %v776_v46, %v1401_v5  ;;  %v1574_v1 = vld [vmem:[#allocation5 + $0x30] sm:$0xff] }
  0x6f   :  { %v755_v0 = vadd.f32 %v747_v48, %v634_v8  ;;  %v756_v19 = vadd.f32 %v748_v49, %v635_v13  ;;  %v758_v38 = vadd.f32 %v750_v51, %v637_v47  ;;  %v890_v29 = vcombine.high %v1565_v17, %v1565_v17 }
  0x70   :  { %v785_v41 = vcombine.high %v783_v3, %v783_v3  ;;  %v799_v58 = vrot.slane %v783_v3, %v1401_v5  ;;  %v806_v2 = vrot.slane %v784_v59, %v1401_v5  ;;  %v814_v62 = vcombine.high %v792_v50, %v792_v50 }
  0x71   :  { %v759_v18 = vadd.f32 %v751_v56, %v638_v54  ;;  %v760_v63 = vadd.f32 %v752_v57, %v639_v55  ;;  %v821_v10 = vrot.slane %v792_v50, %v1411_v24  ;;  %v897_v61 = vrot.slane %v1565_v17, %v1401_v5 }
  0x72   :  { %v813_v8 = vrot.slane %v785_v41, %v1401_v5  ;;  %v815_v13 = vcombine.high %v799_v58, %v799_v58  ;;  %v816_v12 = vcombine.high %v806_v2, %v806_v2  ;;  %v825_v21 = vrot.slane %v806_v2, %v1411_v24 }
  0x73   :  { %v829_v23 = vrot.slane %v814_v62, %v1411_v24  ;;  %v837_v25 = vrot.slane %v799_v58, %v1411_v24  ;;  %v858_v20 = vsub.f32 %v821_v10, %v1574_v1  ;;  %v904_v16 = vrot.slane %v890_v29, %v1401_v5 }
  0x74   :  { %v817_v26 = vcombine.high %v813_v8, %v813_v8  ;;  %v833_v22 = vrot.slane %v816_v12, %v1411_v24  ;;  %v841_v27 = vrot.slane %v813_v8, %v1411_v24  ;;  %v845_v28 = vrot.slane %v815_v13, %v1411_v24 }
  0x75   :  { %v859_v30 = vsub.f32 %v825_v21, %v1574_v1  ;;  %v860_v32 = vsub.f32 %v829_v23, %v1574_v1  ;;  %v862_v33 = vsub.f32 %v837_v25, %v1574_v1  ;;  %v866_v34 = vmul.f32 %v858_v20, %v858_v20 }
  0x76   :  { %v849_v36 = vrot.slane %v817_v26, %v1411_v24  ;;  %v861_v31 = vsub.f32 %v833_v22, %v1574_v1  ;;  %v863_v37 = vsub.f32 %v841_v27, %v1574_v1  ;;  %v864_v40 = vsub.f32 %v845_v28, %v1574_v1 }
  0x77   :  { %v867_v43 = vmul.f32 %v859_v30, %v859_v30  ;;  %v868_v44 = vmul.f32 %v860_v32, %v860_v32  ;;  %v870_v45 = vmul.f32 %v862_v33, %v862_v33  ;;  %v905_v46 = vcombine.high %v897_v61, %v897_v61 }
  0x78   :  { %v865_v47 = vsub.f32 %v849_v36, %v1574_v1  ;;  %v869_v48 = vmul.f32 %v861_v31, %v861_v31  ;;  %v871_v49 = vmul.f32 %v863_v37, %v863_v37  ;;  %v872_v51 = vmul.f32 %v864_v40, %v864_v40 }
  0x79   :  { %v279_v54 = vadd.f32 %v278_v52, %v1424_v39  ;;  %v399_v55 = vmul.f32 %v398_v53, %v398_v53  ;;  %v874_v56 = vadd.f32 %v866_v34, %v753_v11  ;;  %v906_v57 = vcombine.high %v904_v16, %v904_v16  ;;  %v1598_v39 = vld [vmem:[#allocation5 + $0x38] sm:$0xff] }
  0x7a   :  { %v873_v3 = vmul.f32 %v865_v47, %v865_v47  ;;  %v875_v59 = vadd.f32 %v867_v43, %v754_v9  ;;  %v876_v50 = vadd.f32 %v868_v44, %v755_v0  ;;  %v878_v29 = vadd.f32 %v870_v45, %v757_v60 }
  0x7b   :  { %v913_v41 = vrot.slane %v897_v61, %v1401_v5  ;;  %v920_v58 = vrot.slane %v904_v16, %v1401_v5  ;;  %v927_v2 = vrot.slane %v905_v46, %v1401_v5  ;;  %v934_v62 = vrot.slane %v906_v57, %v1401_v5 }
  0x7c   :  { %v877_v10 = vadd.f32 %v869_v48, %v756_v19  ;;  %v879_v8 = vadd.f32 %v871_v49, %v758_v38  ;;  %v880_v13 = vadd.f32 %v872_v51, %v759_v18  ;;  %v881_v12 = vadd.f32 %v873_v3, %v760_v63 }
  0x7d   :  { %v935_v52 = vcombine.high %v913_v41, %v913_v41  ;;  %v936_v53 = vcombine.high %v920_v58, %v920_v58  ;;  %v937_v11 = vcombine.high %v927_v2, %v927_v2  ;;  %v938_v9 = vcombine.high %v934_v62, %v934_v62 }
  0x7e   :  { %v942_v60 = vrot.slane %v913_v41, %v1411_v24  ;;  %v946_v0 = vrot.slane %v927_v2, %v1411_v24  ;;  %v958_v61 = vrot.slane %v920_v58, %v1411_v24  ;;  %v962_v21 = vrot.slane %v934_v62, %v1411_v24 }
  0x7f   :  { %v950_v5 = vrot.slane %v935_v52, %v1411_v24  ;;  %v954_v19 = vrot.slane %v937_v11, %v1411_v24  ;;  %v966_v38 = vrot.slane %v936_v53, %v1411_v24  ;;  %v970_v18 = vrot.slane %v938_v9, %v1411_v24 }
  0x80   :  { %v979_v63 = vsub.f32 %v942_v60, %v1598_v39  ;;  %v980_v23 = vsub.f32 %v946_v0, %v1598_v39  ;;  %v983_v25 = vsub.f32 %v958_v61, %v1598_v39  ;;  %v984_v20 = vsub.f32 %v962_v21, %v1598_v39 }
  0x81   :  { %v981_v16 = vsub.f32 %v950_v5, %v1598_v39  ;;  %v982_v26 = vsub.f32 %v954_v19, %v1598_v39  ;;  %v985_v22 = vsub.f32 %v966_v38, %v1598_v39  ;;  %v986_v27 = vsub.f32 %v970_v18, %v1598_v39 }
  0x82   :  { %v987_v28 = vmul.f32 %v979_v63, %v979_v63  ;;  %v988_v30 = vmul.f32 %v980_v23, %v980_v23  ;;  %v991_v32 = vmul.f32 %v983_v25, %v983_v25  ;;  %v992_v24 = vmul.f32 %v984_v20, %v984_v20 }
  0x83   :  { %v989_v33 = vmul.f32 %v981_v16, %v981_v16  ;;  %v990_v34 = vmul.f32 %v982_v26, %v982_v26  ;;  %v993_v36 = vmul.f32 %v985_v22, %v985_v22  ;;  %v994_v31 = vmul.f32 %v986_v27, %v986_v27 }
  0x84   :  { %v995_v37 = vadd.f32 %v987_v28, %v874_v56  ;;  %v996_v40 = vadd.f32 %v988_v30, %v875_v59  ;;  %v999_v43 = vadd.f32 %v991_v32, %v878_v29  ;;  %v1000_v44 = vadd.f32 %v992_v24, %v879_v8 }
  0x85   :  { %v997_v45 = vadd.f32 %v989_v33, %v876_v50  ;;  %v998_v46 = vadd.f32 %v990_v34, %v877_v10  ;;  %v1001_v47 = vadd.f32 %v993_v36, %v880_v13  ;;  %v1002_v48 = vadd.f32 %v994_v31, %v881_v12 }
  0x86   :  { %v1618_v49 = vsub.f32 %v1447_v35, %v1477_v15  ;;  %v1620_v51 = vmul.f32 -0.0390625, %v995_v37  ;;  %v1622_v57 = vmul.f32 -0.0390625, %v996_v40  ;;  %v1624_v3 = vmul.f32 -0.0390625, %v999_v43 }
  0x87   :  { %v1626_v41 = vmul.f32 -0.0390625, %v997_v45  ;;  %v1628_v56 = vmul.f32 -0.0390625, %v998_v46  ;;  %v1630_v59 = vmul.f32 -0.0390625, %v1000_v44  ;;  %v1632_v50 = vmul.f32 -0.0390625, %v1001_v47 }
  0x88   :  { %v1634_v29 = vadd.f32 %v399_v55, %v279_v54  ;;  %v1636_v58 = vmul.f32 -0.0390625, %v1002_v48  ;;  %v1015_v35 = vrot.slane %v1620_v51, 4  ;;  %v1021_v15 = vrot.slane %v1622_v57, 4 }
  0x89   :  { %v1027_v2 = vrot.slane %v1626_v41, 4  ;;  %v1033_v62 = vrot.slane %v1628_v56, 4  ;;  %v1039_v10 = vrot.slane %v1624_v3, 4  ;;  %v1045_v8 = vrot.slane %v1630_v59, 4 }
  0x8a   :  { %v1016_v13 = vmax.f32 %v1620_v51, %v1015_v35  ;;  %v1022_v12 = vmax.f32 %v1622_v57, %v1021_v15  ;;  %v1051_v54 = vrot.slane %v1632_v50, 4  ;;  %v1057_v55 = vrot.slane %v1636_v58, 4 }
  0x8b   :  { %v1028_v52 = vmax.f32 %v1626_v41, %v1027_v2  ;;  %v1034_v53 = vmax.f32 %v1628_v56, %v1033_v62  ;;  %v1040_v11 = vmax.f32 %v1624_v3, %v1039_v10  ;;  %v1046_v9 = vmax.f32 %v1630_v59, %v1045_v8 }
  0x8c   :  { %v1017_v60 = vrot.slane %v1016_v13, 2  ;;  %v1023_v0 = vrot.slane %v1022_v12, 2  ;;  %v1052_v61 = vmax.f32 %v1632_v50, %v1051_v54  ;;  %v1058_v21 = vmax.f32 %v1636_v58, %v1057_v55 }
  0x8d   :  { %v1029_v5 = vrot.slane %v1028_v52, 2  ;;  %v1035_v19 = vrot.slane %v1034_v53, 2  ;;  %v1041_v38 = vrot.slane %v1040_v11, 2  ;;  %v1047_v18 = vrot.slane %v1046_v9, 2 }
  0x8e   :  { %v1018_v63 = vmax.f32 %v1016_v13, %v1017_v60  ;;  %v1024_v23 = vmax.f32 %v1022_v12, %v1023_v0  ;;  %v1053_v25 = vrot.slane %v1052_v61, 2  ;;  %v1059_v20 = vrot.slane %v1058_v21, 2 }
  0x8f   :  { %v1030_v16 = vmax.f32 %v1028_v52, %v1029_v5  ;;  %v1036_v26 = vmax.f32 %v1034_v53, %v1035_v19  ;;  %v1042_v22 = vmax.f32 %v1040_v11, %v1041_v38  ;;  %v1048_v27 = vmax.f32 %v1046_v9, %v1047_v18 }
  0x90   :  { %v1019_v28 = vrot.slane %v1018_v63, 1  ;;  %v1025_v30 = vrot.slane %v1024_v23, 1  ;;  %v1054_v32 = vmax.f32 %v1052_v61, %v1053_v25  ;;  %v1060_v24 = vmax.f32 %v1058_v21, %v1059_v20 }
  0x91   :  { %v1031_v33 = vrot.slane %v1030_v16, 1  ;;  %v1037_v34 = vrot.slane %v1036_v26, 1  ;;  %v1043_v36 = vrot.slane %v1042_v22, 1  ;;  %v1049_v31 = vrot.slane %v1048_v27, 1 }
  0x92   :  { %v1654_v37 = vmax.f32 %v1018_v63, %v1019_v28  ;;  %v1656_v40 = vmax.f32 %v1024_v23, %v1025_v30  ;;  %v1055_v43 = vrot.slane %v1054_v32, 1  ;;  %v1061_v44 = vrot.slane %v1060_v24, 1 }
  0x93   :  { %v1658_v45 = vmax.f32 %v1030_v16, %v1031_v33  ;;  %v1660_v46 = vmax.f32 %v1036_v26, %v1037_v34  ;;  %v1662_v47 = vmax.f32 %v1042_v22, %v1043_v36  ;;  %v1664_v48 = vmax.f32 %v1048_v27, %v1049_v31 }
  0x94   :  { %v1666_v35 = vmax.f32 %v1054_v32, %v1055_v43  ;;  %v1668_v15 = vmax.f32 %v1060_v24, %v1061_v44  ;;  %v1063_v2 = vsub.f32 %v1620_v51, %v1654_v37  ;;  %v1064_v62 = vsub.f32 %v1622_v57, %v1656_v40 }
  0x95   :  { %v1065_v10 = vsub.f32 %v1626_v41, %v1658_v45  ;;  %v1066_v8 = vsub.f32 %v1628_v56, %v1660_v46  ;;  %v1067_v13 = vsub.f32 %v1624_v3, %v1662_v47  ;;  %v1068_v12 = vsub.f32 %v1630_v59, %v1664_v48 }
  0x96   :  { %v520_v54 = vmul.f32 %v1618_v49, %v1618_v49  ;;  %v1069_v51 = vsub.f32 %v1632_v50, %v1666_v35  ;;  %v1071_v55 = vmul.f32 1.442695, %v1063_v2  ;;  %v1073_v57 = vmul.f32 1.442695, %v1064_v62 }
  0x97   :  { %v640_v41 = vsub.f32 %v1487_v42, %v1512_v14  ;;  %v1070_v56 = vsub.f32 %v1636_v58, %v1668_v15  ;;  %v1075_v52 = vmul.f32 1.442695, %v1065_v10  ;;  %v1077_v53 = vmul.f32 1.442695, %v1066_v8 }
  0x98   :  { %1252 = vpow2.f32 %v1071_v55  ;;  %v1079_v3 = vmul.f32 1.442695, %v1067_v13  ;;  %v1081_v59 = vmul.f32 1.442695, %v1068_v12  ;;  %v521_v11 = vadd.f32 %v520_v54, %v1634_v29 }
  0x99   :  { %1254 = vpow2.f32 %v1073_v57  ;;  %v1083_v49 = vmul.f32 1.442695, %v1069_v51  ;;  %v641_v9 = vmul.f32 %v640_v41, %v640_v41  ;;  %v761_v50 = vsub.f32 %v1503_v6, %v1539_v4 }
  0x9a   :  { %1256 = vpow2.f32 %v1075_v52  ;;  %v1085_v60 = vmul.f32 1.442695, %v1070_v56  ;;  %v882_v58 = vsub.f32 %v1535_v7, %v1574_v1  ;;  %v1003_v6 = vsub.f32 %v1565_v17, %v1598_v39 }
  0x9b   :  { %1258 = vpow2.f32 %v1077_v53  ;;  %v642_v42 = vadd.f32 %v641_v9, %v521_v11  ;;  %v762_v14 = vmul.f32 %v761_v50, %v761_v50 }
  0x9c   :  { %1260 = vpow2.f32 %v1079_v3  ;;  %v883_v21 = vmul.f32 %v882_v58, %v882_v58  ;;  %v1004_v28 = vmul.f32 %v1003_v6, %v1003_v6 }
  0x9d   :  { %1262 = vpow2.f32 %v1081_v59  ;;  %v763_v29 = vadd.f32 %v762_v14, %v642_v42 }
  0x9e   :  { %1264 = vpow2.f32 %v1083_v49 }
  0x9f   :  { %1266 = vpow2.f32 %v1085_v60  ;;  %v884_v26 = vadd.f32 %v883_v21, %v763_v29 }
  0xa1   :  { %v1005_v21 = vadd.f32 %v1004_v28, %v884_v26 }
  0xa2   :  { %v1253_v0 = vpop.eup %1252 }
  0xa3   :  { %v1255_v61 = vpop.eup %1254  ;;  %v1087_v5 = vrot.slane %v1253_v0, 4  ;;  %v1014_v6 = vmul.f32 -0.0390625, %v1005_v21 }
  0xa4   :  { %v1257_v19 = vpop.eup %1256  ;;  %v1093_v4 = vrot.slane %v1255_v61, 4 }
  0xa5   :  { %v1259_v38 = vpop.eup %1258  ;;  %v1088_v18 = vadd.f32 %v1253_v0, %v1087_v5  ;;  %v1099_v63 = vrot.slane %v1257_v19, 4  ;;  %v1161_v26 = vrot.slane %v1014_v6, 2 }
  0xa6   :  { %v1261_v23 = vpop.eup %1260  ;;  %v1094_v25 = vadd.f32 %v1255_v61, %v1093_v4  ;;  %v1105_v20 = vrot.slane %v1259_v38, 4 }
  0xa7   :  { %v1263_v16 = vpop.eup %1262  ;;  %v1089_v7 = vrot.slane %v1088_v18, 2  ;;  %v1100_v1 = vadd.f32 %v1257_v19, %v1099_v63  ;;  %v1111_v22 = vrot.slane %v1261_v23, 4 }
  0xa8   :  { %v1265_v27 = vpop.eup %1264  ;;  %v1095_v30 = vrot.slane %v1094_v25, 2  ;;  %v1106_v32 = vadd.f32 %v1259_v38, %v1105_v20  ;;  %v1117_v24 = vrot.slane %v1263_v16, 4 }
  0xa9   :  { %v1267_v33 = vpop.eup %1266  ;;  %v1090_v34 = vadd.f32 %v1089_v7, %v1088_v18  ;;  %v1101_v17 = vrot.slane %v1100_v1, 2  ;;  %v1112_v39 = vadd.f32 %v1261_v23, %v1111_v22  ;;  %v1123_v36 = vrot.slane %v1265_v27, 4 }
  0xaa   :  { %v1096_v31 = vadd.f32 %v1095_v30, %v1094_v25  ;;  %v1107_v43 = vrot.slane %v1106_v32, 2  ;;  %v1118_v44 = vadd.f32 %v1263_v16, %v1117_v24  ;;  %v1129_v2 = vrot.slane %v1267_v33, 4 }
  0xab   :  { %v1091_v62 = vrot.slane %v1090_v34, 1  ;;  %v1102_v10 = vadd.f32 %v1101_v17, %v1100_v1  ;;  %v1113_v8 = vrot.slane %v1112_v39, 2  ;;  %v1124_v13 = vadd.f32 %v1265_v27, %v1123_v36 }
  0xac   :  { %v1097_v12 = vrot.slane %v1096_v31, 1  ;;  %v1108_v54 = vadd.f32 %v1107_v43, %v1106_v32  ;;  %v1119_v51 = vrot.slane %v1118_v44, 2  ;;  %v1130_v55 = vadd.f32 %v1267_v33, %v1129_v2 }
  0xad   :  { %v1092_v57 = vadd.f32 %v1091_v62, %v1090_v34  ;;  %v1103_v41 = vrot.slane %v1102_v10, 1  ;;  %v1114_v56 = vadd.f32 %v1113_v8, %v1112_v39  ;;  %v1125_v52 = vrot.slane %v1124_v13, 2 }
  0xae   :  { %v1098_v53 = vadd.f32 %v1097_v12, %v1096_v31  ;;  %v1109_v3 = vrot.slane %v1108_v54, 1  ;;  %v1120_v59 = vadd.f32 %v1119_v51, %v1118_v44  ;;  %v1131_v11 = vrot.slane %v1130_v55, 2 }
  0xaf   :  { %v1104_v49 = vadd.f32 %v1103_v41, %v1102_v10  ;;  %v1115_v9 = vrot.slane %v1114_v56, 1  ;;  %v1126_v50 = vadd.f32 %v1125_v52, %v1124_v13  ;;  %1268 = vlog2.f32 %v1092_v57 }
  0xb0   :  { %v1110_v60 = vadd.f32 %v1109_v3, %v1108_v54  ;;  %v1121_v42 = vrot.slane %v1120_v59, 1  ;;  %v1132_v14 = vadd.f32 %v1131_v11, %v1130_v55  ;;  %1270 = vlog2.f32 %v1098_v53 }
  0xb1   :  { %v1116_v58 = vadd.f32 %v1115_v9, %v1114_v56  ;;  %v1127_v0 = vrot.slane %v1126_v50, 1  ;;  %1272 = vlog2.f32 %v1104_v49  ;;  %v1160_v25 = vrot.slane %v1014_v6, 1 }
  0xb2   :  { %v1122_v61 = vadd.f32 %v1121_v42, %v1120_v59  ;;  %v1133_v29 = vrot.slane %v1132_v14, 1  ;;  %1274 = vlog2.f32 %v1110_v60  ;;  %v1162_v1 = vrot.slane %v1014_v6, 3 }
  0xb3   :  { %v1128_v5 = vadd.f32 %v1127_v0, %v1126_v50  ;;  %1276 = vlog2.f32 %v1116_v58  ;;  %v1163_v30 = vrot.slane %v1014_v6, 4  ;;  %v1164_v32 = vrot.slane %v1014_v6, 5 }
  0xb4   :  { %v1134_v19 = vadd.f32 %v1133_v29, %v1132_v14  ;;  %1278 = vlog2.f32 %v1122_v61  ;;  %v1165_v17 = vrot.slane %v1014_v6, 6  ;;  %v1166_v39 = vrot.slane %v1014_v6, 7 }
  0xb5   :  { %1280 = vlog2.f32 %v1128_v5 }
  0xb6   :  { %1282 = vlog2.f32 %v1134_v19 }
  0xb9   :  { %v1269_v4 = vpop.eup %1268 }
  0xba   :  { %v1271_v38 = vpop.eup %1270  ;;  %v1136_v18 = vmul.f32 0.6931472, %v1269_v4 }
  0xbb   :  { %v1273_v63 = vpop.eup %1272  ;;  %v1138_v23 = vmul.f32 0.6931472, %v1271_v38 }
  0xbc   :  { %v1275_v20 = vpop.eup %1274  ;;  %v1140_v16 = vmul.f32 0.6931472, %v1273_v63  ;;  %v1151_v7 = vadd.f32 %v1136_v18, %v1654_v37 }
  0xbd   :  { %v1277_v22 = vpop.eup %1276  ;;  %v1142_v27 = vmul.f32 0.6931472, %v1275_v20  ;;  %v1152_v28 = vadd.f32 %v1138_v23, %v1656_v40 }
  0xbe   :  { %v1279_v24 = vpop.eup %1278  ;;  %v1144_v33 = vmul.f32 0.6931472, %v1277_v22  ;;  %v1153_v34 = vadd.f32 %v1140_v16, %v1658_v45  ;;  %v1175_v44 = vsub.f32 %v1151_v7, %v1014_v6 }
  0xbf   :  { %v1281_v36 = vpop.eup %1280  ;;  %v1146_v31 = vmul.f32 0.6931472, %v1279_v24  ;;  %v1154_v43 = vadd.f32 %v1142_v27, %v1660_v46  ;;  %v1176_v37 = vsub.f32 %v1152_v28, %v1160_v25 }
  0xc0   :  { %v1283_v2 = vpop.eup %1282  ;;  %v1148_v62 = vmul.f32 0.6931472, %v1281_v36  ;;  %v1155_v10 = vadd.f32 %v1144_v33, %v1662_v47  ;;  %v1177_v8 = vsub.f32 %v1153_v34, %v1161_v26 }
  0xc1   :  { %v1150_v40 = vmul.f32 0.6931472, %v1283_v2  ;;  %v1156_v13 = vadd.f32 %v1146_v31, %v1664_v48  ;;  %v1178_v12 = vsub.f32 %v1154_v43, %v1162_v1  ;;  %v1191_v54 = vrot.slane %v1176_v37, 7 }
  0xc2   :  { %v1157_v45 = vadd.f32 %v1148_v62, %v1666_v35  ;;  %v1179_v51 = vsub.f32 %v1155_v10, %v1163_v30  ;;  %v1194_v55 = vrot.slane %v1177_v8, 6 }
  0xc3   :  { %v1158_v46 = vadd.f32 %v1150_v40, %v1668_v15  ;;  %v1180_v57 = vsub.f32 %v1156_v13, %v1164_v32  ;;  %v1193_v41 = vsel %vm1192_vm0, %v1191_v54, %v1175_v44  ;;  %v1197_v56 = vrot.slane %v1178_v12, 5 }
  0xc4   :  { %v1181_v52 = vsub.f32 %v1157_v45, %v1165_v17  ;;  %v1196_v47 = vsel %vm1195_vm1, %v1194_v55, %v1193_v41  ;;  %v1200_v53 = vrot.slane %v1179_v51, 4 }
  0xc5   :  { %v1182_v3 = vsub.f32 %v1158_v46, %v1166_v39  ;;  %v1199_v48 = vsel %vm1198_vm2, %v1197_v56, %v1196_v47  ;;  %v1203_v59 = vrot.slane %v1180_v57, 3 }
  0xc6   :  { %v1202_v35 = vsel %vm1201_vm3, %v1200_v53, %v1199_v48  ;;  %v1206_v11 = vrot.slane %v1181_v52, 2 }
  0xc7   :  { %v1205_v49 = vsel %vm1204_vm4, %v1203_v59, %v1202_v35  ;;  %v1209_v9 = vrot.slane %v1182_v3, 1 }
  0xc8   :  { %v1208_v15 = vsel %vm1207_vm5, %v1206_v11, %v1205_v49 }
  0xc9   :  { %v1211_v50 = vsel %vm1210_vm6, %v1209_v9, %v1208_v15 }
  0xca   :  { %v1213_v60 = vrot.slane %v1211_v50, 4 }
  0xcc   :  { %v1214_v42 = vadd.f32 %v1213_v60, %v1211_v50 }
  0xce   :  { %v1215_v14 = vrot.slane %v1214_v42, 2 }
  0xd0   :  { %v1216_v58 = vadd.f32 %v1215_v14, %v1214_v42 }
  0xd2   :  { %v1217_v0 = vrot.slane %v1216_v58, 1 }
  0xd4   :  { %v1218_v61 = vadd.f32 %v1217_v0, %v1216_v58 }
  0xd6   :  { %v1220_v29 = vmul.f32 0.125, %v1218_v61 }
  0xd8   :  { %1221 = vst [vmem:[#allocation7] sm:$0x1] %v1220_v29 }
  0xd9   :  { %1339 = shalt.err (!%p1336_p6)
}
  0xda   :  { %s1340_s11 = scalar_lea.hbm %s1722_s2, 16 }
  0xdb   :  { %p1341_p7 = scmp.ne.s32.totalorder %s1722_s2, %s1340_s11  ;;  %p1344_p8 = scmp.lt.u32.totalorder %s1340_s11, %s1722_s2 }
  0xdd   :  { %p1346_p9 = pnand %p1344_p8, %p1341_p7 }
  0xdf   :  { %1349 = shalt.err (!%p1346_p9)
}
  0xe0   :  { %1231 = dma.vmem_to_hbm [thread:$0]  %s1229_s6, 16, %s1722_s2, [#allocation4]  }
  0xe1   :  { %1354 = dma.done.wait [#allocation4], 16  }
  0xe2   :  { %1355 = vsyncadd [#allocation4], 4294967280 }
  0xe3   :  { %1235 = vsyncpa [#allocation3], 1 }
  0xe4   :  { %1236 = vsyncpa [#allocation6], 1 }
  0xe5   :  { %1237 = vsyncpa [#allocation4], 1 }

</bundles_post_ra>
